<compile_context>
chip_gen: v7x
topology: tpu7x:2x2x1
jax: 0.10.0
libtpu: 0.0.40
codegen_flags: <defaults>
</compile_context>

<pallas_src>
import functools

import jax
import jax.numpy as jnp
from jax import lax
from jax.experimental import pallas as pl
from jax.experimental.pallas import tpu as pltpu


def _round_up(x, m):
    return (x + m - 1) // m * m


# ----------------------------------------------------------------------------
# Pallas kernel: fusion head + classifier + cross-entropy loss
# ----------------------------------------------------------------------------
def fusion_head_kernel(num_labels, batch,
                       fused_ref, w1_ref, b1_ref, w2_ref, b2_ref, labels_ref,
                       logits_ref, loss_ref):
    # fused_ref: (Bp, Ht+Hi) bf16, already concat([text, img]) + zero-padded rows.
    fused = fused_ref[...]

    # late_fusion: Linear + ReLU (Dropout is identity at inference time).
    h = (jnp.dot(fused, w1_ref[...], preferred_element_type=jnp.float32)
         + b1_ref[...])                                   # (Bp, D) f32 accum
    h = jnp.maximum(h, 0.0)                               # ReLU in f32

    # classifier: Linear(D -> Lp), Lp = 128-padded class dim (zero columns).
    logits = (jnp.dot(h.astype(w2_ref.dtype), w2_ref[...],
                      preferred_element_type=jnp.float32)
              + b2_ref[...])                              # (Bp, Lp) f32
    logits_ref[...] = logits                              # lane-dense store

    # CrossEntropyLoss (mean over the real batch), stable log-softmax in f32.
    col = lax.broadcasted_iota(jnp.int32, logits.shape, 1)
    masked = jnp.where(col < num_labels, logits, jnp.float32(-1e30))
    m = jnp.max(masked, axis=-1, keepdims=True)
    lse = m + jnp.log(jnp.sum(jnp.exp(masked - m), axis=-1, keepdims=True))

    labels = labels_ref[...]                              # (Bp, 1) int32
    onehot = (col == labels).astype(jnp.float32)
    true_logit = jnp.sum(logits * onehot, axis=-1, keepdims=True)   # (Bp, 1)
    nll = lse - true_logit                                           # (Bp, 1)

    row = lax.broadcasted_iota(jnp.int32, nll.shape, 0)
    valid_row = (row < batch).astype(jnp.float32)         # mask padded rows
    loss_ref[0, 0] = jnp.sum(nll * valid_row) * jnp.float32(1.0 / batch)


def multimodal_fusion_head(text_pooled, img_pooled, w1, b1, w2, b2, labels):
    """late_fusion + pred + CrossEntropyLoss as one Pallas kernel."""
    B, Ht = text_pooled.shape
    Hi = img_pooled.shape[1]
    D = w1.shape[1]
    L = w2.shape[1]

    Bp = _round_up(max(B, 1), 8)       # sublane-aligned batch
    Lp = _round_up(max(L, 1), 128)     # lane-dense class dim

    # Concat in the wrapper -> single in-kernel matmul against full w1.
    fused = jnp.concatenate([text_pooled, img_pooled], axis=1).astype(jnp.float32)
    fused = jnp.pad(fused, ((0, Bp - B), (0, 0))).astype(jnp.bfloat16)

    w2p = jnp.pad(w2.astype(jnp.float32), ((0, 0), (0, Lp - L)))
    b2p = jnp.pad(b2.astype(jnp.float32), (0, Lp - L)).reshape(1, Lp)
    labels_p = jnp.pad(labels.astype(jnp.int32), (0, Bp - B)).reshape(Bp, 1)

    vmem = functools.partial(pl.BlockSpec, memory_space=pltpu.MemorySpace.VMEM)
    kernel = functools.partial(fusion_head_kernel, L, B)

    logits_p, loss = pl.pallas_call(
        kernel,
        out_shape=(
            jax.ShapeDtypeStruct((Bp, Lp), jnp.float32),
            jax.ShapeDtypeStruct((1, 1), jnp.float32),
        ),
        in_specs=[vmem()] * 6,
        out_specs=(
            vmem(),
            pl.BlockSpec(memory_space=pltpu.MemorySpace.SMEM),
        ),
    )(
        fused,
        w1.astype(jnp.bfloat16),
        b1.astype(jnp.float32).reshape(1, D),
        w2p.astype(jnp.bfloat16),
        b2p,
        labels_p,
    )
    return {"logits": logits_p[:B, :L], "loss": loss[0, 0]}


# ----------------------------------------------------------------------------
# Stand-in encoders (plain JAX glue).
# TODO(synk): pretrained AutoModel text/image encoders have no Pallas
# equivalent without checkpoints; deterministic toy poolers are used instead.
# ----------------------------------------------------------------------------
def toy_text_encoder(input_ids, emb_table):
    tok = emb_table[input_ids]                 # (B, S, Ht)
    return jnp.tanh(jnp.mean(tok, axis=1))     # pooler_output: (B, Ht)


def toy_image_encoder(pixel_values, proj):
    # pixel_values: NCHW, global average pool over H, W then project.
    pooled = jnp.mean(pixel_values, axis=(2, 3))          # (B, C)
    return jnp.tanh(pooled @ proj)                        # pooler_output: (B, Hi)


# ----------------------------------------------------------------------------
# Pure-JAX reference (same bf16-operand / f32-accumulate matmul recipe)
# ----------------------------------------------------------------------------
def reference_head(text_pooled, img_pooled, w1, b1, w2, b2, labels):
    fused = jnp.concatenate([text_pooled, img_pooled], axis=1)
    h = jnp.maximum(
        jnp.dot(fused.astype(jnp.bfloat16), w1.astype(jnp.bfloat16),
                preferred_element_type=jnp.float32) + b1, 0.0)
    logits = jnp.dot(h.astype(jnp.bfloat16), w2.astype(jnp.bfloat16),
                     preferred_element_type=jnp.float32) + b2
    lse = jax.scipy.special.logsumexp(logits, axis=-1)
    true_logit = jnp.take_along_axis(logits, labels[:, None], axis=-1)[:, 0]
    loss = jnp.mean(lse - true_logit)
    return logits, loss


if __name__ == "__main__":
    # Small, deterministic shapes.
    B, S, VOCAB = 4, 8, 100          # batch, seq-len, toy vocab
    C, H, W = 3, 16, 16              # image NCHW
    HT, HI = 32, 32                  # text / image hidden sizes
    INTER = 128                      # intermediate_dims (lane-aligned)
    NUM_LABELS = 4                   # num_labels

    key = jax.random.PRNGKey(0)
    k_ids, k_pix, k_lbl, k_emb, k_proj, k_w1, k_b1, k_w2, k_b2 = \
        jax.random.split(key, 9)

    # Module inputs.
    input_ids = jax.random.randint(k_ids, (B, S), 0, VOCAB, dtype=jnp.int32)
    pixel_values = jax.random.normal(k_pix, (B, C, H, W), dtype=jnp.float32)
    labels = jax.random.randint(k_lbl, (B,), 0, NUM_LABELS, dtype=jnp.int32)

    # Stand-in encoder parameters.
    emb_table = jax.random.normal(k_emb, (VOCAB, HT), dtype=jnp.float32) * 0.1
    img_proj = jax.random.normal(k_proj, (C, HI), dtype=jnp.float32) * 0.1

    # Fusion head parameters (deterministic init).
    w1 = jax.random.normal(k_w1, (HT + HI, INTER), dtype=jnp.float32) * 0.05
    b1 = jax.random.normal(k_b1, (INTER,), dtype=jnp.float32) * 0.01
    w2 = jax.random.normal(k_w2, (INTER, NUM_LABELS), dtype=jnp.float32) * 0.05
    b2 = jax.random.normal(k_b2, (NUM_LABELS,), dtype=jnp.float32) * 0.01

    # Encoders (glue) -> pooler outputs.
    text_pooled = toy_text_encoder(input_ids, emb_table)
    img_pooled = toy_image_encoder(pixel_values, img_proj)

    # Pallas kernel forward.
    out = multimodal_fusion_head(text_pooled, img_pooled, w1, b1, w2, b2, labels)
    jax.block_until_ready(out["logits"])
    jax.block_until_ready(out["loss"])

    # Verify against pure-JAX reference (same bf16-operand matmul recipe).
    ref_logits, ref_loss = reference_head(
        text_pooled, img_pooled, w1, b1, w2, b2, labels)
    assert out["logits"].shape == (B, NUM_LABELS)
    assert jnp.allclose(out["logits"], ref_logits, atol=2e-3, rtol=2e-3)
    assert jnp.allclose(out["loss"], ref_loss, atol=2e-3, rtol=2e-3)

    print("KERNEL_OK")
</pallas_src>

<mosaic_0001>
module attributes {stable_mosaic.version = 11 : i64} {
  func.func @fusion_head_kernel(%arg0: memref<8x64xbf16, #tpu.memory_space<vmem>>, %arg1: memref<64x128xbf16, #tpu.memory_space<vmem>>, %arg2: memref<1x128xf32, #tpu.memory_space<vmem>>, %arg3: memref<128x128xbf16, #tpu.memory_space<vmem>>, %arg4: memref<1x128xf32, #tpu.memory_space<vmem>>, %arg5: memref<8x1xi32, #tpu.memory_space<vmem>>, %arg6: memref<8x128xf32, #tpu.memory_space<vmem>>, %arg7: memref<1x1xf32, #tpu.memory_space<smem>>) attributes {dimension_semantics = [], scalar_prefetch = 0 : i64, scratch_operands = 0 : i64, tpu.core_type = #tpu.core_type<tc>} {
    %c0 = arith.constant 0 : index
    %c0_0 = arith.constant 0 : index
    %0 = vector.load %arg0[%c0, %c0_0] : memref<8x64xbf16, #tpu.memory_space<vmem>>, vector<8x64xbf16>
    %c0_1 = arith.constant 0 : index
    %c0_2 = arith.constant 0 : index
    %1 = vector.load %arg1[%c0_1, %c0_2] : memref<64x128xbf16, #tpu.memory_space<vmem>>, vector<64x128xbf16>
    %cst = arith.constant dense<0.000000e+00> : vector<8x128xf32>
    %2 = tpu.matmul %0, %1, %cst {dimension_numbers = #tpu.dot_dimension_numbers<[1], [0], [0], [1], [0, 0, 1, 1], [], []>} : vector<8x64xbf16>, vector<64x128xbf16>, vector<8x128xf32> -> vector<8x128xf32>
    %c0_3 = arith.constant 0 : index
    %c0_4 = arith.constant 0 : index
    %3 = vector.load %arg2[%c0_3, %c0_4] : memref<1x128xf32, #tpu.memory_space<vmem>>, vector<1x128xf32>
    %4 = vector.broadcast %3 : vector<1x128xf32> to vector<8x128xf32>
    %5 = arith.addf %2, %4 : vector<8x128xf32>
    %cst_5 = arith.constant 0.000000e+00 : f32
    %6 = vector.broadcast %cst_5 : f32 to vector<8x128xf32>
    %7 = arith.maximumf %5, %6 : vector<8x128xf32>
    %8 = arith.truncf %7 : vector<8x128xf32> to vector<8x128xbf16>
    %c0_6 = arith.constant 0 : index
    %c0_7 = arith.constant 0 : index
    %9 = vector.load %arg3[%c0_6, %c0_7] : memref<128x128xbf16, #tpu.memory_space<vmem>>, vector<128x128xbf16>
    %cst_8 = arith.constant dense<0.000000e+00> : vector<8x128xf32>
    %10 = tpu.matmul %8, %9, %cst_8 {dimension_numbers = #tpu.dot_dimension_numbers<[1], [0], [0], [1], [0, 0, 1, 1], [], []>} : vector<8x128xbf16>, vector<128x128xbf16>, vector<8x128xf32> -> vector<8x128xf32>
    %c0_9 = arith.constant 0 : index
    %c0_10 = arith.constant 0 : index
    %11 = vector.load %arg4[%c0_9, %c0_10] : memref<1x128xf32, #tpu.memory_space<vmem>>, vector<1x128xf32>
    %12 = vector.broadcast %11 : vector<1x128xf32> to vector<8x128xf32>
    %13 = arith.addf %10, %12 : vector<8x128xf32>
    %c0_11 = arith.constant 0 : index
    %c0_12 = arith.constant 0 : index
    %14 = vector.load %arg6[%c0_11, %c0_12] : memref<8x128xf32, #tpu.memory_space<vmem>>, vector<8x128xf32>
    tpu.vector_store %arg6[%c0_11, %c0_12], %13 {strides = array<i32>} : memref<8x128xf32, #tpu.memory_space<vmem>>, vector<8x128xf32>,
    %15 = tpu.iota {dimensions = array<i32: 1>} : vector<8x128xi32>
    %c4_i32 = arith.constant 4 : i32
    %16 = vector.broadcast %c4_i32 : i32 to vector<8x128xi32>
    %17 = arith.cmpi slt, %15, %16 : vector<8x128xi32>
    %cst_13 = arith.constant -1.000000e+30 : f32
    %18 = vector.broadcast %cst_13 : f32 to vector<8x128xf32>
    %19 = arith.select %17, %13, %18 : vector<8x128xi1>, vector<8x128xf32>
    %cst_14 = arith.constant dense<0xFF800000> : vector<8xf32>
    %20 = vector.multi_reduction <maximumf>, %19, %cst_14 [1] : vector<8x128xf32> to vector<8xf32>
    %21 = vector.shape_cast %20 : vector<8xf32> to vector<8x1xf32>
    %22 = vector.broadcast %21 : vector<8x1xf32> to vector<8x128xf32>
    %23 = arith.subf %19, %22 : vector<8x128xf32>
    %24 = math.exp %23 : vector<8x128xf32>
    %cst_15 = arith.constant dense<0.000000e+00> : vector<8xf32>
    %25 = vector.multi_reduction <add>, %24, %cst_15 [1] : vector<8x128xf32> to vector<8xf32>
    %26 = vector.shape_cast %25 : vector<8xf32> to vector<8x1xf32>
    %27 = math.log %26 : vector<8x1xf32>
    %28 = arith.addf %21, %27 : vector<8x1xf32>
    %c0_16 = arith.constant 0 : index
    %c0_17 = arith.constant 0 : index
    %29 = vector.load %arg5[%c0_16, %c0_17] : memref<8x1xi32, #tpu.memory_space<vmem>>, vector<8x1xi32>
    %30 = vector.broadcast %29 : vector<8x1xi32> to vector<8x128xi32>
    %31 = arith.cmpi eq, %15, %30 : vector<8x128xi32>
    %32 = arith.extui %31 : vector<8x128xi1> to vector<8x128xi32>
    %33 = arith.sitofp %32 : vector<8x128xi32> to vector<8x128xf32>
    %34 = arith.mulf %13, %33 : vector<8x128xf32>
    %cst_18 = arith.constant dense<0.000000e+00> : vector<8xf32>
    %35 = vector.multi_reduction <add>, %34, %cst_18 [1] : vector<8x128xf32> to vector<8xf32>
    %36 = vector.shape_cast %35 : vector<8xf32> to vector<8x1xf32>
    %37 = arith.subf %28, %36 : vector<8x1xf32>
    %38 = tpu.iota {dimensions = array<i32: 0>} : vector<8x1xi32>
    %c4_i32_19 = arith.constant 4 : i32
    %39 = vector.broadcast %c4_i32_19 : i32 to vector<8x1xi32>
    %40 = arith.cmpi slt, %38, %39 : vector<8x1xi32>
    %41 = arith.extui %40 : vector<8x1xi1> to vector<8x1xi32>
    %42 = arith.sitofp %41 : vector<8x1xi32> to vector<8x1xf32>
    %43 = arith.mulf %37, %42 : vector<8x1xf32>
    %44 = vector.shape_cast %43 : vector<8x1xf32> to vector<1x8x1xf32>
    %cst_20 = arith.constant dense<0.000000e+00> : vector<1xf32>
    %45 = vector.multi_reduction <add>, %44, %cst_20 [1, 2] : vector<1x8x1xf32> to vector<1xf32>
    %46 = vector.shape_cast %45 : vector<1xf32> to vector<1x1x1xf32>
    %47 = vector.extract %46[0, 0, 0] : f32 from vector<1x1x1xf32>
    %cst_21 = arith.constant 2.500000e-01 : f32
    %48 = arith.mulf %47, %cst_21 : f32
    %c0_22 = arith.constant 0 : index
    %c0_23 = arith.constant 0 : index
    %49 = memref.load %arg7[%c0_22, %c0_23] : memref<1x1xf32, #tpu.memory_space<smem>>
    memref.store %48, %arg7[%c0_22, %c0_23] : memref<1x1xf32, #tpu.memory_space<smem>>
    return
  }
}

</mosaic_0001>

<bundles_post_ra>
// kernel: tpu_custom_call.1
= control target key start
LH: loop header
LB: loop body
LE: loop exit
PB: predicated region body
PF: predicated region fallthrough
CT: control target
= control target key end

     0   :  { %13 = vsyncpa [#allocation3], 0  ;;  %s628_s0 = inlined_call_operand.vmem [shape: bf16[8,64], index: 0, kind: input, shape index: {}]   ;;  %s629_s1 = inlined_call_operand.hbm [shape: bf16[64,128], index: 1, kind: input, shape index: {}]   ;;  %s630_s2 = inlined_call_operand.vmem [shape: f32[1,128], index: 2, kind: input, shape index: {}]   ;;  %s631_s3 = inlined_call_operand.hbm [shape: bf16[128,128], index: 3, kind: input, shape index: {}]   ;;  %s632_s4 = inlined_call_operand.vmem [shape: f32[1,128], index: 4, kind: input, shape index: {}]   ;;  %s633_s5 = inlined_call_operand.vmem [shape: s32[8,1], index: 5, kind: input, shape index: {}]   ;;  %s634_s6 = inlined_call_operand.hbm [shape: f32[8,128], index: 6, kind: output, shape index: {0}]   ;;  %s635_s7 = inlined_call_operand.hbm [shape: f32[1,1], index: 7, kind: output, shape index: {1}]  }
   0x1   :  { %14 = vsyncpa [#allocation7], 0 }
   0x2   :  { %15 = vsyncpa [#allocation4], 0 }
   0x3   :  { %16 = vsyncpa [#allocation5], 0  ;;  %s503_s24 = smov [#allocation2]   ;;  %s419_s28 = scalar_lea.hbm %s629_s1, 512 }
   0x4   :  { %s24_s25 = sshll.u32 %s503_s24, 4  ;;  %p420_p0 = scmp.ne.s32.totalorder %s629_s1, %s419_s28  ;;  %s25_s25 = int_to_ptr.vmem [resolvable:$true] %s24_s25 }
   0x5   :  { %p423_p1 = scmp.lt.u32.totalorder %s419_s28, %s629_s1 }
   0x7   :  { %p425_p2 = pnand %p423_p1, %p420_p0 }
   0x9   :  { %428 = shalt.err (!%p425_p2)
}
   0xa   :  { %s429_s10 = scalar_lea.vmem %s25_s25, 512  ;;  %p434_p4 = scmp.lt.s32.totalorder %s25_s25, %s25_s25 }
   0xb   :  { %p430_p3 = scmp.ne.s32.totalorder %s25_s25, %s429_s10  ;;  %p435_p5 = scmp.lt.s32.totalorder %s429_s10, %s429_s10 }
   0xd   :  { %p436_p6 = por %p435_p5, %p434_p4 }
   0xf   :  { %p437_p7 = pnand %p436_p6, %p430_p3 }
  0x11   :  { %440 = shalt.err (!%p437_p7)
}
  0x12   :  { %s504_s11 = smov 64   ;;  %s505_s12 = smov 4  }
  0x13   :  { %30 = dma.hbm_to_vmem [thread:$0]  %s629_s1, 512, %s25_s25, [#allocation3], %s504_s11, %s504_s11, %s505_s12  }
  0x14   :  { %s506_s15 = smov [#allocation6]   ;;  %s441_s19 = scalar_lea.hbm %s631_s3, 1024 }
  0x15   :  { %s38_s16 = sshll.u32 %s506_s15, 4  ;;  %p442_p8 = scmp.ne.s32.totalorder %s631_s3, %s441_s19  ;;  %s39_s16 = int_to_ptr.vmem [resolvable:$true] %s38_s16 }
  0x16   :  { %p445_p9 = scmp.lt.u32.totalorder %s441_s19, %s631_s3 }
  0x18   :  { %p447_p10 = pnand %p445_p9, %p442_p8 }
  0x1a   :  { %450 = shalt.err (!%p447_p10)
}
  0x1b   :  { %s451_s24 = scalar_lea.vmem %s39_s16, 1024  ;;  %p456_p12 = scmp.lt.s32.totalorder %s39_s16, %s39_s16 }
  0x1c   :  { %p452_p11 = scmp.ne.s32.totalorder %s39_s16, %s451_s24  ;;  %p457_p13 = scmp.lt.s32.totalorder %s451_s24, %s451_s24 }
  0x1e   :  { %p458_p0 = por %p457_p13, %p456_p12 }
  0x20   :  { %p459_p1 = pnand %p458_p0, %p452_p11 }
  0x22   :  { %462 = shalt.err (!%p459_p1)
}
  0x23   :  { %44 = dma.hbm_to_vmem [thread:$0]  %s631_s3, 1024, %s39_s16, [#allocation7], %s504_s11, %s504_s11, %s505_s12  }
  0x24   :  { %495 = dma.done.wait [#allocation3], 512  }
  0x25   :  { %496 = vsyncadd [#allocation3], 4294966784 }
  0x26   :  { %497 = dma.done.wait [#allocation7], 1024  }
  0x27   :  { %498 = vsyncadd [#allocation7], 4294966272  ;;  %v507_v0 = vmov 0.0   ;;  %vm508_vm0 = vmmov 0   ;;  %v403_v1 = vld [vmem:[#allocation2] sm:$0xff]   ;;  %v404_v2 = vld [vmem:[#allocation2 + $0x8] sm:$0xff]   ;;  %v254_v23 = vlaneseq }
  0x28   :  { %359 = vmatprep.subr.bf16.mxu0 %v507_v0  ;;  %367 = vmatprep.mubr.msk.bf16.mxu0 %vm508_vm0, %v507_v0  ;;  %v407_v3 = vld [vmem:[#allocation6] sm:$0xff]   ;;  %v405_v4 = vld [vmem:[#allocation2 + $0x10] sm:$0xff]   ;;  %v408_v5 = vld [vmem:[#allocation6 + $0x8] sm:$0xff]   ;;  %vm96_vm1 = vcmask 523264   ;;  %v509_v22 = vmov 0   ;;  %vm285_vm5 = vcmask 7168  }
  0x29   :  { %371 = vmatprep.subr.bf16.mxu1 %v507_v0  ;;  %387 = vmatprep.mubr.msk.bf16.mxu1 %vm508_vm0, %v507_v0  ;;  %v406_v6 = vld [vmem:[#allocation2 + $0x18] sm:$0xff]   ;;  %v409_v7 = vld [vmem:[#allocation6 + $0x10] sm:$0xff]   ;;  %v56_v8 = vld [vmem:[%s628_s0] sm:$0xf]  ;;  %v255_v24 = vand.u32 127, %v254_v23  ;;  %v280_v41 = vshrl.u32 %v254_v23, 7 }
  0x2a   :  { %360 = vmatpush3.bf16.msra.mxu0 %v403_v1  ;;  %372 = vmatpush3.bf16.msra.mxu1 %v407_v3  ;;  %v410_v9 = vld [vmem:[#allocation6 + $0x18] sm:$0xff]   ;;  %v411_v10 = vld [vmem:[#allocation6 + $0x20] sm:$0xff]   ;;  %v412_v11 = vld [vmem:[#allocation6 + $0x28] sm:$0xff]  }
  0x2b   :  { %361 = vmatprep.subr.bf16.mxu0 %v507_v0  ;;  %373 = vmatprep.subr.bf16.mxu1 %v507_v0  ;;  %v413_v12 = vld [vmem:[#allocation6 + $0x30] sm:$0xff]   ;;  %v414_v13 = vld [vmem:[#allocation6 + $0x38] sm:$0xff]   ;;  %v328_v14 = vld [vmem:[%s630_s2] ss:$0 sm:$0xff]  ;;  %vm256_vm2 = vcmp.lt.s32.totalorder %v255_v24, 4  ;;  %vm281_vm4 = vcmp.lt.s32.totalorder %v280_v41, 4 }
  0x2c   :  { %402 = vset.pattern.permute.xlu0 %v509_v22  ;;  %v334_v25 = vld [vmem:[%s632_s4] ss:$0 sm:$0xff]  ;;  %v344_v46 = vsel %vm281_vm4, 1.0, %v507_v0  ;;  %s510_s4 = smov [#allocation8]  }
  0x2d   :  { %v268_v32 = vld [vmem:[%s633_s5] sm:$0xff]  ;;  %s305_s5 = sshll.u32 %s510_s4, 4  ;;  %s306_s5 = int_to_ptr.vmem [resolvable:$true] %s305_s5 }
  0x2e   :  { %362 = vmatpush3.bf16.msra.mxu0 %v404_v2  ;;  %374 = vmatpush3.bf16.msra.mxu1 %v408_v5  ;;  %s463_s8 = scalar_lea.vmem %s306_s5, 128  ;;  %p468_p3 = scmp.lt.s32.totalorder %s306_s5, %s306_s5 }
  0x2f   :  { %363 = vmatprep.subr.bf16.mxu0 %v507_v0  ;;  %375 = vmatprep.subr.bf16.mxu1 %v507_v0  ;;  %p464_p2 = scmp.ne.s32.totalorder %s306_s5, %s463_s8  ;;  %p469_p4 = scmp.lt.s32.totalorder %s463_s8, %s463_s8 }
  0x31   :  { %p470_p5 = por %p469_p4, %p468_p3 }
  0x32   :  { %364 = vmatpush3.bf16.msra.mxu0 %v405_v4  ;;  %376 = vmatpush3.bf16.msra.mxu1 %v409_v7 }
  0x33   :  { %365 = vmatprep.subr.bf16.mxu0 %v507_v0  ;;  %377 = vmatprep.subr.bf16.mxu1 %v507_v0  ;;  %p471_p6 = pnand %p470_p5, %p464_p2 }
  0x36   :  { %366 = vmatpush3.bf16.msra.mxu0 %v406_v6  ;;  %378 = vmatpush3.bf16.msra.mxu1 %v410_v9 }
  0x37   :  { %379 = vmatprep.subr.bf16.mxu1 %v507_v0 }
  0x39   :  { %368 = vmatmul.mubr.msk.bf16.vlgmr.msra.gmra.mrb[0].mxu0 %vm96_vm1, %v56_v8 }
  0x3a   :  { %380 = vmatpush3.bf16.msra.mxu1 %v411_v10 }
  0x3b   :  { %381 = vmatprep.subr.bf16.mxu1 %v507_v0 }
  0x3e   :  { %382 = vmatpush3.bf16.msra.mxu1 %v412_v11 }
  0x3f   :  { %383 = vmatprep.subr.bf16.mxu1 %v507_v0 }
  0x42   :  { %384 = vmatpush3.bf16.msra.mxu1 %v413_v12 }
  0x43   :  { %385 = vmatprep.subr.bf16.mxu1 %v507_v0 }
  0x46   :  { %386 = vmatpush3.bf16.msra.mxu1 %v414_v13 }
 0x10c   :  { %v134_v15 = vpop.f32.mrb[0].mxu0 }
 0x10d   :  { %v135_v16 = vadd.f32 %v328_v14, %v134_v15  ;;  %v369_v17 = vpop.f32.mrb[1].mxu0 }
 0x10e   :  { %v137_v18 = vpop.f32.mrb[2].mxu0 }
 0x10f   :  { %v140_v19 = vmax.f32 %v135_v16, 0.0  ;;  %v370_v20 = vpop.f32.mrb[3].mxu0 }
 0x111   :  { %v141_v21 = vpack.c.bf16 %v140_v19, %v140_v19 }
 0x113   :  { %388 = vmatmul.mubr.bf16.vlgmr.msra.gmra.mrb[0].mxu1 %v141_v21 }
 0x1e6   :  { %v247_v26 = vpop.f32.mrb[0].mxu1 }
 0x1e7   :  { %v248_v27 = vadd.f32 %v334_v25, %v247_v26  ;;  %v389_v28 = vpop.f32.mrb[1].mxu1 }
 0x1e8   :  { %v250_v29 = vpop.f32.mrb[2].mxu1 }
 0x1e9   :  { %253 = vst [vmem:[#allocation8] sm:$0xff] %v248_v27  ;;  %v390_v30 = vpop.f32.mrb[3].mxu1  ;;  %v257_v31 = vsel %vm256_vm2, %v248_v27, -1e+30 }
 0x1ea   :  { %258 = vmax.xlane.f32.xlu0 %v257_v31 }
 0x200   :  { %270 = vperm.xlu0 %402, %v268_v32  }
 0x277   :  { %v259_v33 = vpop.xlane.xlu0 %258 }
 0x278   :  { %v260_v34 = vsub.f32 %v257_v31, %v259_v33 }
 0x27a   :  { %v261_v35 = vmul.f32 1.442695, %v260_v34 }
 0x27c   :  { %415 = vpow2.f32 %v261_v35 }
 0x27f   :  { %v271_v36 = vpop.permute.xlu0 %270 }
 0x280   :  { %vm272_vm3 = vcmp.eq.s32.totalorder %v255_v24, %v271_v36 }
 0x281   :  { %v343_v38 = vsel %vm272_vm3, 1.0, %v507_v0 }
 0x282   :  { %v275_v39 = vmul.f32 %v343_v38, %v248_v27 }
 0x286   :  { %v416_v37 = vpop.eup %415 }
 0x287   :  { %263 = vadd.xlane.f32.xlu1 %v416_v37 }
 0x28b   :  { %276 = vadd.xlane.f32.xlu1 %v275_v39 }
 0x314   :  { %v264_v40 = vpop.xlane.xlu1 %263 }
 0x315   :  { %417 = vlog2.f32 %v264_v40 }
 0x318   :  { %v277_v45 = vpop.xlane.xlu1 %276 }
 0x31f   :  { %v418_v42 = vpop.eup %417 }
 0x320   :  { %v266_v43 = vmul.f32 0.6931472, %v418_v42 }
 0x322   :  { %v267_v44 = vadd.f32 %v266_v43, %v259_v33 }
 0x324   :  { %v278_v47 = vsub.f32 %v267_v44, %v277_v45 }
 0x326   :  { %v284_v48 = vmul.f32 %v344_v46, %v278_v47 }
 0x328   :  { %v286_v49 = vsel %vm285_vm5, %v284_v48, 0.0 }
 0x329   :  { %287 = vadd.xlane.f32.xlu1 %v286_v49 }
 0x32a   :  { %474 = shalt.err (!%p471_p6)
}
 0x32b   :  { %s475_s11 = scalar_lea.hbm %s634_s6, 128 }
 0x32c   :  { %p476_p7 = scmp.ne.s32.totalorder %s634_s6, %s475_s11  ;;  %p479_p8 = scmp.lt.u32.totalorder %s475_s11, %s634_s6 }
 0x32e   :  { %p481_p9 = pnand %p479_p8, %p476_p7 }
 0x330   :  { %484 = shalt.err (!%p481_p9)
}
 0x331   :  { %308 = dma.vmem_to_hbm [thread:$0]  %s306_s5, 128, %s634_s6, [#allocation4]  }
 0x332   :  { %s485_s22 = scalar_lea.hbm %s635_s7, 16 }
 0x333   :  { %p486_p10 = scmp.ne.s32.totalorder %s635_s7, %s485_s22  ;;  %p489_p11 = scmp.lt.u32.totalorder %s485_s22, %s635_s7 }
 0x335   :  { %p491_p12 = pnand %p489_p11, %p486_p10 }
 0x3b6   :  { %v288_v50 = vpop.xlane.xlu1 %287 }
 0x3b7   :  { %v289_v51 = vrot.slane %v288_v50, 4 }
 0x3b9   :  { %v290_v52 = vadd.f32 %v289_v51, %v288_v50 }
 0x3bb   :  { %v291_v53 = vrot.slane %v290_v52, 2 }
 0x3bd   :  { %v292_v54 = vadd.f32 %v291_v53, %v290_v52 }
 0x3bf   :  { %v293_v55 = vrot.slane %v292_v54, 1 }
 0x3c1   :  { %v294_v56 = vadd.f32 %v293_v55, %v292_v54 }
 0x3c3   :  { %391 = vpush %v294_v56 }
 0x3f4   :  { %s392_s18 = spop %391 }
 0x3f5   :  { %s296_s19 = smul.f32 0.25, %s392_s18 }
 0x3f7   :  { %298 = sst [smem:[#allocation9]] %s296_s19 }
 0x3f8   :  { %494 = shalt.err (!%p491_p12)
}
 0x3f9   :  { %s511_s25 = smov [#allocation9]  }
 0x3fa   :  { %316 = dma.smem_to_hbm %s511_s25, 16, %s635_s7, [#allocation5]  }
 0x3fb   :  { %499 = dma.done.wait [#allocation4], 128  }
 0x3fc   :  { %500 = vsyncadd [#allocation4], 4294967168 }
 0x3fd   :  { %501 = dma.done.wait [#allocation5], 16  }
 0x3fe   :  { %502 = vsyncadd [#allocation5], 4294967280 }
 0x3ff   :  { %323 = sfence }
 0x400   :  { %324 = vsyncpa [#allocation3], 1 }
 0x401   :  { %325 = vsyncpa [#allocation7], 1 }
 0x402   :  { %326 = vsyncpa [#allocation4], 1 }
 0x403   :  { %327 = vsyncpa [#allocation5], 1 }

</bundles_post_ra>
